<compile_context>
chip_gen: v6e
topology: v6e:2x2x1
jax: 0.10.0
libtpu: 0.0.40
codegen_flags: <defaults>
</compile_context>

<pallas_src>
import math

import jax
import jax.numpy as jnp
from jax import lax
from jax.experimental import pallas as pl
from jax.experimental.pallas import tpu as pltpu

_INV_SQRT2 = 1.0 / math.sqrt(2.0)


def _head_transform_kernel(x_ref, wt_ref, b_ref, g_ref, beta_ref, o_ref):
    """One row-tile: dense (bf16 MXU, f32 acc) -> exact erf-gelu -> TF LayerNorm."""
    # MXU: bf16 x bf16 operands, f32 accumulation.  x is already bf16 (cast
    # once in the wrapper), so no in-kernel repack of the activation tile.
    y = jnp.dot(x_ref[...], wt_ref[...], preferred_element_type=jnp.float32)
    y = y + b_ref[...]                                       # (TM, H) f32

    # Exact gelu: y * 0.5 * (1 + erf(y / sqrt(2)))  (bit-pattern of torch gelu).
    # NOTE: erf lowers to a VALU polynomial; if bit-exact parity is not needed
    # downstream, the tanh-approximation would move this to the idle EUP slot.
    y = y * 0.5 * (1.0 + lax.erf(y * _INV_SQRT2))

    # TF-style LayerNorm (biased variance, eps inside the sqrt).  One-pass
    # stats: sum(y) and sum(y*y) reduce the same tile so the two XLU
    # reductions are not serialized behind a full-tile subtract.
    inv_h = 1.0 / y.shape[-1]
    u = jnp.sum(y, axis=-1, keepdims=True) * inv_h
    ex2 = jnp.sum(y * y, axis=-1, keepdims=True) * inv_h
    var = jnp.maximum(ex2 - u * u, 0.0)
    y = (y - u) * lax.rsqrt(var + 1e-12)

    o_ref[...] = (g_ref[...] * y + beta_ref[...]).astype(o_ref.dtype)


def _round_up(x, m):
    return -(-x // m) * m


def _tpu_vmem_capacity_bytes():
    """Generation-aware VMEM capacity; falls back to the v7x per-TC minimum."""
    try:
        info = pltpu.get_tpu_info()
        for attr in ("vmem_capacity_bytes", "vmem_bytes", "vmem_size_bytes",
                     "vmem_capacity", "vmem_size"):
            val = getattr(info, attr, None)
            if val:
                return int(val)
    except Exception:
        pass
    return 64 << 20  # conservative: v7x has 64 MiB per TensorCore


def bert_prediction_head_transform(hidden_states, dense_w, dense_b, ln_w, ln_b,
                                   *, block_m=None, matmul_dtype=jnp.bfloat16,
                                   out_dtype=None):
    """hidden_states: (B, S, H).  dense_w: (H, H) laid out [out, in] like nn.Linear."""
    B, S, H = hidden_states.shape
    M = B * S
    out_dtype = hidden_states.dtype if out_dtype is None else out_dtype

    vmem_cap = _tpu_vmem_capacity_bytes()
    if block_m is None:
        # 2048-row tiles on 128 MiB parts (v5e/v6e), 1024 on 64 MiB parts (v7x).
        block_m = 2048 if vmem_cap >= (96 << 20) else 1024

    # Row tile: multiple of 16 (bf16 sublane packing).  Prefer >= 2 blocks so
    # the "parallel" grid axis can split across v7x's two TensorCores.
    tm_half = _round_up(-(-M // 2), 16)
    tm = max(16, min(block_m, tm_half))
    num_blocks = -(-M // tm)
    m_total = num_blocks * tm

    # bf16 activations end-to-end: halves input-tile HBM traffic (this kernel
    # is memory-bound at BERT sizes) and feeds the MXU its native dtype.
    x2d = hidden_states.reshape(M, H).astype(matmul_dtype)
    if m_total != M:
        x2d = jnp.pad(x2d, ((0, m_total - M), (0, 0)))

    # Pre-transpose + bf16-cast the weight once in the wrapper.
    wt = dense_w.T.astype(matmul_dtype)                    # (in, out), resident
    b2d = dense_b.reshape(1, H).astype(jnp.float32)
    g2d = ln_w.reshape(1, H).astype(jnp.float32)
    beta2d = ln_b.reshape(1, H).astype(jnp.float32)

    in_isz = jnp.dtype(matmul_dtype).itemsize
    out_isz = jnp.dtype(out_dtype).itemsize
    wt_bytes = H * H * in_isz
    # doubled resident weight + double-buffered in/out tiles + f32 epilogue
    # temporaries (y / stats) + params + headroom.
    vmem_needed = (2 * wt_bytes + 2 * tm * H * in_isz + 2 * tm * H * out_isz
                   + 3 * tm * H * 4 + 8 * H * 4 + (2 << 20))
    # Cap at ~75% of physical VMEM: ~48 MiB on v7x, ~96 MiB on v5e/v6e.
    vmem_limit = int(min(max(vmem_needed, 32 << 20), (3 * vmem_cap) // 4))

    cost = pl.CostEstimate(
        flops=2 * m_total * H * H + 25 * m_total * H,   # matmul + gelu/LN epilogue
        transcendentals=0,                              # erf is a VALU polynomial
        bytes_accessed=m_total * H * (in_isz + out_isz) + wt_bytes + 3 * H * 4,
    )

    out2d = pl.pallas_call(
        _head_transform_kernel,
        out_shape=jax.ShapeDtypeStruct((m_total, H), out_dtype),
        grid_spec=pltpu.PrefetchScalarGridSpec(
            num_scalar_prefetch=0,
            grid=(num_blocks,),
            in_specs=[
                pl.BlockSpec((tm, H), lambda i: (i, 0)),   # x tile (pipelined)
                pl.BlockSpec((H, H), lambda i: (0, 0)),    # weight (VMEM-resident)
                pl.BlockSpec((1, H), lambda i: (0, 0)),    # dense bias
                pl.BlockSpec((1, H), lambda i: (0, 0)),    # LN gamma
                pl.BlockSpec((1, H), lambda i: (0, 0)),    # LN beta
            ],
            out_specs=pl.BlockSpec((tm, H), lambda i: (i, 0)),
        ),
        compiler_params=pltpu.CompilerParams(
            dimension_semantics=("parallel",),   # independent row blocks
            vmem_limit_bytes=vmem_limit,
        ),
        cost_estimate=cost,
    )(x2d, wt, b2d, g2d, beta2d)

    return out2d[:M].reshape(B, S, H)


if __name__ == "__main__":
    # Small shapes implied by the module: (batch, seq, hidden).
    # NOTE: H=32 < 128 works because the block spans the full array dim, but
    # production shapes should keep H a multiple of 128 for lane-dense stores.
    B, S, H = 2, 8, 32

    key = jax.random.PRNGKey(0)
    k_x, k_w, k_b = jax.random.split(key, 3)

    x = jax.random.normal(k_x, (B, S, H), dtype=jnp.float32)

    # Deterministic synthetic parameters (nn.Linear layout: (out, in)).
    dense_w = jax.random.normal(k_w, (H, H), dtype=jnp.float32) * 0.02
    dense_b = jax.random.normal(k_b, (H,), dtype=jnp.float32) * 0.02
    ln_w = jnp.ones((H,), dtype=jnp.float32)
    ln_b = jnp.zeros((H,), dtype=jnp.float32)

    out = bert_prediction_head_transform(x, dense_w, dense_b, ln_w, ln_b)
    out = jax.block_until_ready(out)

    # Pure-JAX f32 reference (same math as the PyTorch module).
    def ref(xv):
        y = jnp.einsum("bsh,oh->bso", xv, dense_w) + dense_b
        y = y * 0.5 * (1.0 + lax.erf(y / math.sqrt(2.0)))
        u = jnp.mean(y, axis=-1, keepdims=True)
        s = jnp.mean((y - u) ** 2, axis=-1, keepdims=True)
        y = (y - u) / jnp.sqrt(s + 1e-12)
        return ln_w * y + ln_b

    # Tolerance loosened vs pure-f32 because activations + matmul operands are
    # bf16 (f32 accumulation keeps the LayerNorm statistics accurate).
    assert out.shape == (B, S, H)
    assert jnp.allclose(out, ref(x), atol=5e-2, rtol=5e-2)
    print("KERNEL_OK")
</pallas_src>

<mosaic_0001>
module attributes {stable_mosaic.version = 11 : i64} {
  func.func @_head_transform_kernel(%arg0: i32, %arg1: memref<16x32xbf16, #tpu.memory_space<vmem>>, %arg2: memref<32x32xbf16, #tpu.memory_space<vmem>>, %arg3: memref<1x32xf32, #tpu.memory_space<vmem>>, %arg4: memref<1x32xf32, #tpu.memory_space<vmem>>, %arg5: memref<1x32xf32, #tpu.memory_space<vmem>>, %arg6: memref<16x32xf32, #tpu.memory_space<vmem>>) attributes {dimension_semantics = [#tpu.dimension_semantics<parallel>], iteration_bounds = array<i64: 1>, scalar_prefetch = 0 : i64, scratch_operands = 0 : i64, tpu.core_type = #tpu.core_type<tc>, window_params = [{transform_indices = @transform_0, window_bounds = array<i64: 16, 32>}, {pipeline_mode = #tpu.pipeline_mode<synchronous>, transform_indices = @transform_1, window_bounds = array<i64: 32, 32>}, {pipeline_mode = #tpu.pipeline_mode<synchronous>, transform_indices = @transform_2, window_bounds = array<i64: 1, 32>}, {pipeline_mode = #tpu.pipeline_mode<synchronous>, transform_indices = @transform_3, window_bounds = array<i64: 1, 32>}, {pipeline_mode = #tpu.pipeline_mode<synchronous>, transform_indices = @transform_4, window_bounds = array<i64: 1, 32>}, {transform_indices = @transform_5, window_bounds = array<i64: 16, 32>}]} {
    %c0 = arith.constant 0 : index
    %c0_0 = arith.constant 0 : index
    %0 = vector.load %arg1[%c0, %c0_0] : memref<16x32xbf16, #tpu.memory_space<vmem>>, vector<16x32xbf16>
    %c0_1 = arith.constant 0 : index
    %c0_2 = arith.constant 0 : index
    %1 = vector.load %arg2[%c0_1, %c0_2] : memref<32x32xbf16, #tpu.memory_space<vmem>>, vector<32x32xbf16>
    %cst = arith.constant dense<0.000000e+00> : vector<16x32xf32>
    %2 = tpu.matmul %0, %1, %cst {dimension_numbers = #tpu.dot_dimension_numbers<[1], [0], [0], [1], [0, 0, 1, 1], [], []>} : vector<16x32xbf16>, vector<32x32xbf16>, vector<16x32xf32> -> vector<16x32xf32>
    %c0_3 = arith.constant 0 : index
    %c0_4 = arith.constant 0 : index
    %3 = vector.load %arg3[%c0_3, %c0_4] : memref<1x32xf32, #tpu.memory_space<vmem>>, vector<1x32xf32>
    %4 = vector.broadcast %3 : vector<1x32xf32> to vector<16x32xf32>
    %5 = arith.addf %2, %4 : vector<16x32xf32>
    %cst_5 = arith.constant 5.000000e-01 : f32
    %6 = vector.broadcast %cst_5 : f32 to vector<16x32xf32>
    %7 = arith.mulf %5, %6 : vector<16x32xf32>
    %cst_6 = arith.constant 0.707106769 : f32
    %8 = vector.broadcast %cst_6 : f32 to vector<16x32xf32>
    %9 = arith.mulf %5, %8 : vector<16x32xf32>
    %10 = math.erf %9 : vector<16x32xf32>
    %cst_7 = arith.constant 1.000000e+00 : f32
    %11 = vector.broadcast %cst_7 : f32 to vector<16x32xf32>
    %12 = arith.addf %11, %10 : vector<16x32xf32>
    %13 = arith.mulf %7, %12 : vector<16x32xf32>
    %cst_8 = arith.constant dense<0.000000e+00> : vector<16xf32>
    %14 = vector.multi_reduction <add>, %13, %cst_8 [1] : vector<16x32xf32> to vector<16xf32>
    %15 = vector.shape_cast %14 : vector<16xf32> to vector<16x1xf32>
    %cst_9 = arith.constant 3.125000e-02 : f32
    %16 = vector.broadcast %cst_9 : f32 to vector<16x1xf32>
    %17 = arith.mulf %15, %16 : vector<16x1xf32>
    %18 = arith.mulf %13, %13 : vector<16x32xf32>
    %cst_10 = arith.constant dense<0.000000e+00> : vector<16xf32>
    %19 = vector.multi_reduction <add>, %18, %cst_10 [1] : vector<16x32xf32> to vector<16xf32>
    %20 = vector.shape_cast %19 : vector<16xf32> to vector<16x1xf32>
    %cst_11 = arith.constant 3.125000e-02 : f32
    %21 = vector.broadcast %cst_11 : f32 to vector<16x1xf32>
    %22 = arith.mulf %20, %21 : vector<16x1xf32>
    %23 = arith.mulf %17, %17 : vector<16x1xf32>
    %24 = arith.subf %22, %23 : vector<16x1xf32>
    %cst_12 = arith.constant 0.000000e+00 : f32
    %25 = vector.broadcast %cst_12 : f32 to vector<16x1xf32>
    %26 = arith.maximumf %24, %25 : vector<16x1xf32>
    %27 = vector.broadcast %17 : vector<16x1xf32> to vector<16x32xf32>
    %28 = arith.subf %13, %27 : vector<16x32xf32>
    %cst_13 = arith.constant 9.99999996E-13 : f32
    %29 = vector.broadcast %cst_13 : f32 to vector<16x1xf32>
    %30 = arith.addf %26, %29 : vector<16x1xf32>
    %31 = math.rsqrt %30 : vector<16x1xf32>
    %32 = vector.broadcast %31 : vector<16x1xf32> to vector<16x32xf32>
    %33 = arith.mulf %28, %32 : vector<16x32xf32>
    %c0_14 = arith.constant 0 : index
    %c0_15 = arith.constant 0 : index
    %34 = vector.load %arg4[%c0_14, %c0_15] : memref<1x32xf32, #tpu.memory_space<vmem>>, vector<1x32xf32>
    %35 = vector.broadcast %34 : vector<1x32xf32> to vector<16x32xf32>
    %36 = arith.mulf %35, %33 : vector<16x32xf32>
    %c0_16 = arith.constant 0 : index
    %c0_17 = arith.constant 0 : index
    %37 = vector.load %arg5[%c0_16, %c0_17] : memref<1x32xf32, #tpu.memory_space<vmem>>, vector<1x32xf32>
    %38 = vector.broadcast %37 : vector<1x32xf32> to vector<16x32xf32>
    %39 = arith.addf %36, %38 : vector<16x32xf32>
    %c0_18 = arith.constant 0 : index
    %c0_19 = arith.constant 0 : index
    %40 = vector.load %arg6[%c0_18, %c0_19] : memref<16x32xf32, #tpu.memory_space<vmem>>, vector<16x32xf32>
    tpu.vector_store %arg6[%c0_18, %c0_19], %39 {strides = array<i32>} : memref<16x32xf32, #tpu.memory_space<vmem>>, vector<16x32xf32>,
    return
  }
  func.func @transform_0(%arg0: i32) -> (i32, i32) {
    %c0_i32 = arith.constant 0 : i32
    %c0_i32_0 = arith.constant 0 : i32
    return %arg0, %c0_i32 : i32, i32
  }
  func.func @transform_1(%arg0: i32) -> (i32, i32) {
    %c0_i32 = arith.constant 0 : i32
    %c0_i32_0 = arith.constant 0 : i32
    %c0_i32_1 = arith.constant 0 : i32
    return %c0_i32, %c0_i32_0 : i32, i32
  }
  func.func @transform_2(%arg0: i32) -> (i32, i32) {
    %c0_i32 = arith.constant 0 : i32
    %c0_i32_0 = arith.constant 0 : i32
    %c0_i32_1 = arith.constant 0 : i32
    return %c0_i32, %c0_i32_0 : i32, i32
  }
  func.func @transform_3(%arg0: i32) -> (i32, i32) {
    %c0_i32 = arith.constant 0 : i32
    %c0_i32_0 = arith.constant 0 : i32
    %c0_i32_1 = arith.constant 0 : i32
    return %c0_i32, %c0_i32_0 : i32, i32
  }
  func.func @transform_4(%arg0: i32) -> (i32, i32) {
    %c0_i32 = arith.constant 0 : i32
    %c0_i32_0 = arith.constant 0 : i32
    %c0_i32_1 = arith.constant 0 : i32
    return %c0_i32, %c0_i32_0 : i32, i32
  }
  func.func @transform_5(%arg0: i32) -> (i32, i32) {
    %c0_i32 = arith.constant 0 : i32
    %c0_i32_0 = arith.constant 0 : i32
    return %arg0, %c0_i32 : i32, i32
  }
}

</mosaic_0001>

<bundles_post_ra>
// kernel: tpu_custom_call.1
= control target key start
LH: loop header
LB: loop body
LE: loop exit
PB: predicated region body
PF: predicated region fallthrough
CT: control target
= control target key end

     0   :  { %10 = vsyncpa [#allocation3], 0  ;;  %s373_s0 = inlined_call_operand.hbm [shape: bf16[16,32], index: 0, kind: input, shape index: {}]   ;;  %s374_s1 = inlined_call_operand.hbm [shape: bf16[32,32], index: 1, kind: input, shape index: {}]   ;;  %s375_s2 = inlined_call_operand.vmem [shape: f32[1,32], index: 2, kind: input, shape index: {}]   ;;  %s376_s3 = inlined_call_operand.vmem [shape: f32[1,32], index: 3, kind: input, shape index: {}]   ;;  %s377_s4 = inlined_call_operand.vmem [shape: f32[1,32], index: 4, kind: input, shape index: {}]   ;;  %s378_s5 = inlined_call_operand.hbm [shape: f32[16,32], index: 5, kind: output, shape index: {}]  }
   0x1   :  { %11 = vsyncpa [#allocation6], 0 }
   0x2   :  { %12 = vsyncpa [#allocation4], 0  ;;  %s309_s18 = smov [#allocation2]  }
   0x3   :  { %s18_s19 = sshll.u32 %s309_s18, 4  ;;  %s19_s19 = int_to_ptr.vmem [resolvable:$true] %s18_s19 }
   0x4   :  { %s251_s20 = scalar_lea.vmem %s19_s19, 128  ;;  %p256_p1 = scmp.lt.s32.totalorder %s19_s19, %s19_s19 }
   0x5   :  { %p252_p0 = scmp.ne.s32.totalorder %s19_s19, %s251_s20  ;;  %p257_p2 = scmp.lt.s32.totalorder %s251_s20, %s251_s20 }
   0x7   :  { %p258_p3 = por %p257_p2, %p256_p1 }
   0x9   :  { %p259_p4 = pnand %p258_p3, %p252_p0 }
   0xb   :  { %262 = shalt.err (!%p259_p4)
}
   0xc   :  { %s310_s21 = smov 64   ;;  %s311_s22 = smov 4  }
   0xd   :  { %24 = dma.hbm_to_vmem [thread:$0]  %s373_s0, 128, %s19_s19, [#allocation3], %s310_s21, %s310_s21, %s311_s22  }
   0xe   :  { %s312_s25 = smov [#allocation5]  }
   0xf   :  { %s30_s26 = sshll.u32 %s312_s25, 4  ;;  %s31_s26 = int_to_ptr.vmem [resolvable:$true] %s30_s26 }
  0x10   :  { %s271_s27 = scalar_lea.vmem %s31_s26, 256  ;;  %p276_p6 = scmp.lt.s32.totalorder %s31_s26, %s31_s26 }
  0x11   :  { %p272_p5 = scmp.ne.s32.totalorder %s31_s26, %s271_s27  ;;  %p277_p7 = scmp.lt.s32.totalorder %s271_s27, %s271_s27 }
  0x13   :  { %p278_p8 = por %p277_p7, %p276_p6 }
  0x15   :  { %p279_p9 = pnand %p278_p8, %p272_p5 }
  0x17   :  { %282 = shalt.err (!%p279_p9)
}
  0x18   :  { %36 = dma.hbm_to_vmem [thread:$0]  %s374_s1, 256, %s31_s26, [#allocation6], %s310_s21, %s310_s21, %s311_s22  }
  0x19   :  { %303 = dma.done.wait [#allocation3], 128  }
  0x1a   :  { %304 = vsyncadd [#allocation3], 4294967168 }
  0x1b   :  { %305 = dma.done.wait [#allocation6], 256  }
  0x1c   :  { %306 = vsyncadd [#allocation6], 4294967040  ;;  %v313_v0 = vmov 0.0   ;;  %vm314_vm0 = vmmov 0   ;;  %v232_v1 = vld [vmem:[#allocation5 + $0x8] sm:$0xff]   ;;  %v233_v2 = vld [vmem:[#allocation5] sm:$0xff]  }
  0x1d   :  { %215 = vmatprep.subr.bf16.mxu0 %v313_v0  ;;  %219 = vmatprep.mubr.msk.bf16.mxu0 %vm314_vm0, %v313_v0  ;;  %v234_v3 = vld [vmem:[#allocation2] sm:$0xff]   ;;  %vm80_vm1 = vcmask 261120   ;;  %s315_s8 = smov [#allocation7]  }
  0x1e   :  { %216 = vmatpush3.bf16.msra.mxu0 %v232_v1  ;;  %v205_v4 = vld [vmem:[%s375_s2] ss:$0 sm:$0xff]  ;;  %s192_s9 = sshll.u32 %s315_s8, 4  ;;  %s193_s9 = int_to_ptr.vmem [resolvable:$true] %s192_s9 }
  0x1f   :  { %217 = vmatprep.subr.bf16.mxu0 %v313_v0  ;;  %v210_v45 = vld [vmem:[%s376_s3] ss:$0 sm:$0xff]  ;;  %s283_s3 = scalar_lea.vmem %s193_s9, 256  ;;  %p288_p11 = scmp.lt.s32.totalorder %s193_s9, %s193_s9 }
  0x20   :  { %v211_v47 = vld [vmem:[%s377_s4] ss:$0 sm:$0xff]  ;;  %p284_p10 = scmp.ne.s32.totalorder %s193_s9, %s283_s3  ;;  %p289_p12 = scmp.lt.s32.totalorder %s283_s3, %s283_s3 }
  0x22   :  { %218 = vmatpush3.bf16.msra.mxu0 %v233_v2  ;;  %p290_p13 = por %p289_p12, %p288_p11 }
  0x24   :  { %p291_p0 = pnand %p290_p13, %p284_p10 }
  0x25   :  { %220 = vmatmul.mubr.msk.bf16.vlgmr.msra.gmra.mxu0 %vm80_vm1, %v234_v3 }
  0xe5   :  { %v118_v5 = vpop.f32.mrf.mxu0 }
  0xe6   :  { %v119_v6 = vadd.f32 %v205_v4, %v118_v5 }
  0xe7   :  { %v221_v7 = vpop.f32.mrf.mxu0 }
  0xe8   :  { %v127_v8 = vmul.f32 0.70710677, %v119_v6  ;;  %v125_v14 = vmul.f32 0.5, %v119_v6 }
  0xe9   :  { %v121_v9 = vpop.f32.mrf.mxu0 }
  0xea   :  { %235 = verf.f32 %v127_v8  ;;  %v122_v10 = vadd.f32 %v205_v4, %v121_v9 }
  0xeb   :  { %v222_v11 = vpop.f32.mrf.mxu0 }
  0xec   :  { %v128_v12 = vmul.f32 0.70710677, %v122_v10  ;;  %v126_v18 = vmul.f32 0.5, %v122_v10 }
  0xee   :  { %237 = verf.f32 %v128_v12 }
  0xf7   :  { %v236_v13 = vpop.eup %235 }
  0xf8   :  { %v131_v15 = vadd.f32 1.0, %v236_v13 }
  0xfa   :  { %v133_v16 = vmul.f32 %v131_v15, %v125_v14 }
  0xfb   :  { %v238_v17 = vpop.eup %237 }
  0xfc   :  { %v132_v19 = vadd.f32 1.0, %v238_v17  ;;  %v135_v20 = vsel %vm80_vm1, %v133_v16, 0.0  ;;  %v143_v21 = vmul.f32 %v133_v16, %v133_v16 }
  0xfd   :  { %136 = vadd.xlane.f32.xlu0 %v135_v20 }
  0xfe   :  { %v134_v22 = vmul.f32 %v132_v19, %v126_v18  ;;  %v145_v23 = vsel %vm80_vm1, %v143_v21, 0.0 }
  0xff   :  { %146 = vadd.xlane.f32.xlu1 %v145_v23 }
 0x100   :  { %v138_v24 = vsel %vm80_vm1, %v134_v22, 0.0  ;;  %v144_v25 = vmul.f32 %v134_v22, %v134_v22 }
 0x101   :  { %139 = vadd.xlane.f32.xlu0 %v138_v24 }
 0x102   :  { %v148_v26 = vsel %vm80_vm1, %v144_v25, 0.0 }
 0x103   :  { %149 = vadd.xlane.f32.xlu1 %v148_v26 }
 0x186   :  { %v137_v27 = vpop.xlane.xlu0 %136 }
 0x187   :  { %v141_v28 = vmul.f32 0.03125, %v137_v27 }
 0x188   :  { %v147_v29 = vpop.xlane.xlu1 %146 }
 0x189   :  { %v153_v30 = vmul.f32 %v141_v28, %v141_v28  ;;  %v151_v31 = vmul.f32 0.03125, %v147_v29  ;;  %v159_v43 = vsub.f32 %v133_v16, %v141_v28 }
 0x18a   :  { %v140_v32 = vpop.xlane.xlu0 %139 }
 0x18b   :  { %v155_v33 = vsub.f32 %v151_v31, %v153_v30  ;;  %v142_v34 = vmul.f32 0.03125, %v140_v32 }
 0x18c   :  { %v150_v35 = vpop.xlane.xlu1 %149 }
 0x18d   :  { %v157_v36 = vmax.f32 %v155_v33, 0.0  ;;  %v154_v37 = vmul.f32 %v142_v34, %v142_v34  ;;  %v152_v38 = vmul.f32 0.03125, %v150_v35  ;;  %v160_v48 = vsub.f32 %v134_v22, %v142_v34 }
 0x18f   :  { %v161_v39 = vadd.f32 1e-12, %v157_v36  ;;  %v156_v40 = vsub.f32 %v152_v38, %v154_v37 }
 0x191   :  { %239 = vrsqrt.f32 %v161_v39  ;;  %v158_v41 = vmax.f32 %v156_v40, 0.0 }
 0x193   :  { %v162_v42 = vadd.f32 1e-12, %v158_v41 }
 0x195   :  { %241 = vrsqrt.f32 %v162_v42 }
 0x19e   :  { %v240_v44 = vpop.eup %239 }
 0x19f   :  { %v165_v46 = vmul.f32 %v240_v44, %v159_v43 }
 0x1a1   :  { %v174_v49 = vmul.f32 %v210_v45, %v165_v46 }
 0x1a2   :  { %v242_v50 = vpop.eup %241 }
 0x1a3   :  { %v166_v51 = vmul.f32 %v242_v50, %v160_v48  ;;  %v183_v52 = vadd.f32 %v211_v47, %v174_v49 }
 0x1a5   :  { %v175_v53 = vmul.f32 %v210_v45, %v166_v51  ;;  %185 = vst.msk [vmem:[#allocation7] sm:$0xff] %vm80_vm1, %v183_v52 }
 0x1a7   :  { %v184_v54 = vadd.f32 %v211_v47, %v175_v53 }
 0x1a9   :  { %186 = vst.msk [vmem:[#allocation7 + $0x8] sm:$0xff] %vm80_vm1, %v184_v54 }
 0x1aa   :  { %294 = shalt.err (!%p291_p0)
}
 0x1ab   :  { %s316_s4 = smov 128   ;;  %s317_s10 = smov 8  }
 0x1ac   :  { %198 = dma.vmem_to_hbm [thread:$0]  %s193_s9, 256, %s378_s5, [#allocation4], %s316_s4, %s316_s4, %s317_s10  }
 0x1ad   :  { %307 = dma.done.wait [#allocation4], 256  }
 0x1ae   :  { %308 = vsyncadd [#allocation4], 4294967040 }
 0x1af   :  { %202 = vsyncpa [#allocation3], 1 }
 0x1b0   :  { %203 = vsyncpa [#allocation6], 1 }
 0x1b1   :  { %204 = vsyncpa [#allocation4], 1 }

</bundles_post_ra>
